<compile_context>
chip_gen: v6e
topology: v6e:2x2x1
jax: 0.10.0
libtpu: 0.0.40
codegen_flags: <defaults>
</compile_context>

<pallas_src>
import functools

import jax
import jax.numpy as jnp
from jax import lax
from jax.experimental import pallas as pl
from jax.experimental.pallas import tpu as pltpu

SUB = 8  # sublane granularity: all row counts / batch tiles are multiples of 8


def _round_up(x, m):
    return (x + m - 1) // m * m


def _cdiv(a, b):
    return (a + b - 1) // b


def _layout(dims):
    """Row-compact packed-parameter layout.

    dims = [state_dim, *hidden_dims, action_dim]
    Layer i: W_i occupies rows [w_off, w_off + in_pad) (8-aligned), its bias is
    the single row b_off = w_off + in_pad (also 8-aligned), followed by 7 pad
    rows so the next layer's weight block stays 8-aligned.
    Slab lane width = max padded output dim over all layers.
    """
    meta = []
    row = 0
    wmax = SUB
    for i in range(len(dims) - 1):
        in_pad = _round_up(dims[i], SUB)
        out_pad = _round_up(dims[i + 1], SUB)
        wmax = max(wmax, out_pad)
        meta.append((row, row + in_pad, in_pad, out_pad))
        row += in_pad + SUB
    return tuple(meta), row, wmax


def pack_params(params, *, use_bf16=False):
    """One-time packing of all Linear weights/biases into a compact slab.

    Call ONCE at init (outside the rollout loop) and reuse the returned dict
    for every forward call.
    """
    ws, bs = params["ws"], params["bs"]
    dims = [ws[0].shape[0]] + [w.shape[1] for w in ws]
    assert all(d >= 1 for d in dims)
    meta, total_rows, wmax = _layout(dims)
    compute_dtype = jnp.bfloat16 if use_bf16 else jnp.float32

    packed = jnp.zeros((total_rows, wmax), jnp.float32)
    for (w_off, b_off, _, _), w, b in zip(meta, ws, bs):
        packed = packed.at[w_off:w_off + w.shape[0], : w.shape[1]].set(
            w.astype(jnp.float32))
        packed = packed.at[b_off, : b.shape[-1]].set(
            b.reshape(-1).astype(jnp.float32))
    packed = packed.astype(compute_dtype)

    slope = jnp.asarray(params["prelu_a"], jnp.float32).reshape(1)

    return {
        "packed": packed,          # (total_rows, wmax) compute_dtype
        "slope": slope,            # (1,) fp32, shared PReLU slope
        "meta": meta,              # static per-layer (w_off, b_off, in_pad, out_pad)
        "state_dim": dims[0],
        "action_dim": dims[-1],
        "compute_dtype": compute_dtype,
    }


def _policy_kernel(meta, action_dim, slope_ref, x_ref, p_ref, o_ref):
    """Whole MLP + masked softmax for one batch tile.

    slope_ref : SMEM (1,) fp32        shared PReLU slope
    x_ref     : (TB, IN_PAD)          activations (fp32 or bf16), pad lanes = 0
    p_ref     : (ROWS, WMAX)          VMEM-resident packed weights + biases
    o_ref     : (TB, OUT_PAD) fp32    softmax probs in lanes [0, action_dim)
    """
    a = slope_ref[0]                                   # scalar PReLU slope
    n_layers = len(meta)
    h = x_ref[...]
    logits = None
    for li, (w_off, b_off, in_pad, out_pad) in enumerate(meta):
        w = p_ref[w_off:w_off + in_pad, 0:out_pad]     # static, 8-aligned slice
        b = p_ref[b_off:b_off + 1, 0:out_pad].astype(jnp.float32)
        z = jnp.dot(h, w, preferred_element_type=jnp.float32) + b
        if li < n_layers - 1:
            z = jnp.where(z >= 0.0, z, a * z)          # shared PReLU (fp32)
            h = z.astype(x_ref.dtype)
        else:
            logits = z

    # Softmax over the first `action_dim` lanes; remaining lanes are padding.
    col = lax.broadcasted_iota(jnp.int32, logits.shape, 1)
    logits = jnp.where(col < action_dim, logits, jnp.float32(-1e30))
    m = jnp.max(logits, axis=1, keepdims=True)
    e = jnp.exp(logits - m)                            # padded lanes -> 0.0
    denom = jnp.sum(e, axis=1, keepdims=True)
    r = pl.reciprocal(denom, approx=True)              # EUP, nearly free
    r = r * (2.0 - denom * r)                          # Newton step -> fp32 accuracy
    o_ref[...] = (e * r).astype(o_ref.dtype)


def policy_net_discrete_forward(x, net, *, block_batch=2048):
    """Forward pass: (batch, state_dim) -> (batch, action_dim) softmax probs."""
    meta = net["meta"]
    action_dim = net["action_dim"]
    state_dim = net["state_dim"]
    compute_dtype = net["compute_dtype"]
    packed = net["packed"]
    slope = net["slope"]

    batch = x.shape[0]
    assert x.ndim == 2 and x.shape[1] == state_dim and batch >= 1
    in_pad = meta[0][2]
    out_pad = meta[-1][3]

    # Batch tiling: pad rows only to a multiple of 8; split into >=2 tiles once
    # there is enough work so both TensorCores get a tile on v7x.
    bp = _round_up(batch, SUB)
    n_tiles = max(_cdiv(bp, block_batch), 2 if bp >= 512 else 1)
    tb = _round_up(_cdiv(bp, n_tiles), SUB)
    batch_pad = _round_up(bp, tb)

    if batch == batch_pad and state_dim == in_pad and x.dtype == compute_dtype:
        x_in = x                                       # zero-copy fast path
    else:
        x_in = jnp.zeros((batch_pad, in_pad), compute_dtype)
        x_in = x_in.at[:batch, :state_dim].set(x.astype(compute_dtype))

    grid = (batch_pad // tb,)
    kernel = functools.partial(_policy_kernel, meta, action_dim)

    out = pl.pallas_call(
        kernel,
        out_shape=jax.ShapeDtypeStruct((batch_pad, out_pad), jnp.float32),
        grid=grid,
        in_specs=[
            pl.BlockSpec(memory_space=pltpu.MemorySpace.SMEM),      # PReLU slope
            pl.BlockSpec((tb, in_pad), lambda i: (i, 0)),           # x tile
            pl.BlockSpec(packed.shape, lambda i: (0, 0)),           # resident params
        ],
        out_specs=pl.BlockSpec((tb, out_pad), lambda i: (i, 0)),
        compiler_params=pltpu.CompilerParams(
            dimension_semantics=("parallel",),   # batch tiles shard over TCs (v7x)
        ),
    )(slope, x_in, packed)

    return out[:batch, :action_dim]


def init_params(key, state_dim, hidden_dims, action_dim):
    """Matches the PyTorch module init:
    - hidden Linear: xavier_uniform weight, zero bias
    - fc_out: uniform(-0.1, 0.1) weight, zero bias
    - shared PReLU: single slope = 0.25
    Weights stored as (in_features, out_features)."""
    ws, bs = [], []
    prev = state_dim
    for h in hidden_dims:
        key, sub = jax.random.split(key)
        limit = jnp.sqrt(6.0 / (prev + h))  # xavier_uniform
        ws.append(jax.random.uniform(sub, (prev, h), jnp.float32, -limit, limit))
        bs.append(jnp.zeros((1, h), jnp.float32))
        prev = h
    key, sub = jax.random.split(key)
    ws.append(jax.random.uniform(sub, (prev, action_dim), jnp.float32, -0.1, 0.1))
    bs.append(jnp.zeros((1, action_dim), jnp.float32))
    return {"prelu_a": jnp.array([0.25], jnp.float32), "ws": ws, "bs": bs}


def reference_forward(x, params):
    a = params["prelu_a"][0]
    h = x
    ws, bs = params["ws"], params["bs"]
    for w, b in zip(ws[:-1], bs[:-1]):
        h = h @ w + b
        h = jnp.where(h >= 0.0, h, a * h)
    logits = h @ ws[-1] + bs[-1]
    return jax.nn.softmax(logits, axis=1)


if __name__ == "__main__":
    state_dim = 5      # env.observation_space.shape[0]
    hidden_dims = [32, 32]
    action_dim = 2     # len(action_list)

    key = jax.random.PRNGKey(0)
    key, kx_small, kx_big = jax.random.split(key, 3)
    params = init_params(key, state_dim, hidden_dims, action_dim)

    # Pack parameters ONCE (hoisted out of the per-call path).
    # TODO(synk): in production on v5e/v6e/v7x prefer pack_params(use_bf16=True);
    # kept fp32 here to match the fp32 PyTorch reference within 1e-5.
    net = pack_params(params, use_bf16=False)

    # Small batch (matches the original module usage).
    batch = 8
    x = jax.random.normal(kx_small, (batch, state_dim), jnp.float32)
    out = jax.block_until_ready(policy_net_discrete_forward(x, net))
    ref = reference_forward(x, params)
    assert out.shape == (batch, action_dim)
    assert jnp.allclose(out, ref, atol=1e-5, rtol=1e-5)
    assert jnp.allclose(jnp.sum(out, axis=1), 1.0, atol=1e-5)

    # Larger batch exercises the multi-tile ("parallel") pipelined grid path.
    big_batch = 1024
    xb = jax.random.normal(kx_big, (big_batch, state_dim), jnp.float32)
    outb = jax.block_until_ready(
        policy_net_discrete_forward(xb, net, block_batch=2048)
    )
    refb = reference_forward(xb, params)
    assert outb.shape == (big_batch, action_dim)
    assert jnp.allclose(outb, refb, atol=1e-5, rtol=1e-5)
    assert jnp.allclose(jnp.sum(outb, axis=1), 1.0, atol=1e-5)

    print("KERNEL_OK")
</pallas_src>

<mosaic_0001>
module attributes {stable_mosaic.version = 11 : i64} {
  func.func @_policy_kernel(%arg0: i32, %arg1: memref<1xf32, #tpu.memory_space<smem>>, %arg2: memref<8x8xf32, #tpu.memory_space<vmem>>, %arg3: memref<96x32xf32, #tpu.memory_space<vmem>>, %arg4: memref<8x8xf32, #tpu.memory_space<vmem>>) attributes {dimension_semantics = [#tpu.dimension_semantics<parallel>], iteration_bounds = array<i64: 1>, scalar_prefetch = 0 : i64, scratch_operands = 0 : i64, tpu.core_type = #tpu.core_type<tc>, window_params = [{transform_indices = @transform_0, window_bounds = array<i64: 1>}, {transform_indices = @transform_1, window_bounds = array<i64: 8, 8>}, {pipeline_mode = #tpu.pipeline_mode<synchronous>, transform_indices = @transform_2, window_bounds = array<i64: 96, 32>}, {transform_indices = @transform_3, window_bounds = array<i64: 8, 8>}]} {
    %c0 = arith.constant 0 : index
    %0 = memref.load %arg1[%c0] : memref<1xf32, #tpu.memory_space<smem>>
    %c0_0 = arith.constant 0 : index
    %c0_1 = arith.constant 0 : index
    %1 = vector.load %arg2[%c0_0, %c0_1] : memref<8x8xf32, #tpu.memory_space<vmem>>, vector<8x8xf32>
    %c0_2 = arith.constant 0 : index
    %c0_3 = arith.constant 0 : index
    %2 = vector.load %arg3[%c0_2, %c0_3] : memref<96x32xf32, #tpu.memory_space<vmem>>, vector<8x32xf32>
    %c8 = arith.constant 8 : index
    %c0_4 = arith.constant 0 : index
    %3 = vector.load %arg3[%c8, %c0_4] : memref<96x32xf32, #tpu.memory_space<vmem>>, vector<1x32xf32>
    %cst = arith.constant dense<0.000000e+00> : vector<8x32xf32>
    %4 = tpu.matmul %1, %2, %cst {dimension_numbers = #tpu.dot_dimension_numbers<[1], [0], [0], [1], [0, 0, 1, 1], [], []>} : vector<8x8xf32>, vector<8x32xf32>, vector<8x32xf32> -> vector<8x32xf32>
    %5 = vector.broadcast %3 : vector<1x32xf32> to vector<8x32xf32>
    %6 = arith.addf %4, %5 : vector<8x32xf32>
    %cst_5 = arith.constant 0.000000e+00 : f32
    %7 = vector.broadcast %cst_5 : f32 to vector<8x32xf32>
    %8 = arith.cmpf oge, %6, %7 : vector<8x32xf32>
    %9 = vector.broadcast %0 : f32 to vector<8x32xf32>
    %10 = arith.mulf %9, %6 : vector<8x32xf32>
    %11 = arith.select %8, %6, %10 : vector<8x32xi1>, vector<8x32xf32>
    %c16 = arith.constant 16 : index
    %c0_6 = arith.constant 0 : index
    %12 = vector.load %arg3[%c16, %c0_6] : memref<96x32xf32, #tpu.memory_space<vmem>>, vector<32x32xf32>
    %c48 = arith.constant 48 : index
    %c0_7 = arith.constant 0 : index
    %13 = vector.load %arg3[%c48, %c0_7] : memref<96x32xf32, #tpu.memory_space<vmem>>, vector<1x32xf32>
    %cst_8 = arith.constant dense<0.000000e+00> : vector<8x32xf32>
    %14 = tpu.matmul %11, %12, %cst_8 {dimension_numbers = #tpu.dot_dimension_numbers<[1], [0], [0], [1], [0, 0, 1, 1], [], []>} : vector<8x32xf32>, vector<32x32xf32>, vector<8x32xf32> -> vector<8x32xf32>
    %15 = vector.broadcast %13 : vector<1x32xf32> to vector<8x32xf32>
    %16 = arith.addf %14, %15 : vector<8x32xf32>
    %cst_9 = arith.constant 0.000000e+00 : f32
    %17 = vector.broadcast %cst_9 : f32 to vector<8x32xf32>
    %18 = arith.cmpf oge, %16, %17 : vector<8x32xf32>
    %19 = vector.broadcast %0 : f32 to vector<8x32xf32>
    %20 = arith.mulf %19, %16 : vector<8x32xf32>
    %21 = arith.select %18, %16, %20 : vector<8x32xi1>, vector<8x32xf32>
    %c56 = arith.constant 56 : index
    %c0_10 = arith.constant 0 : index
    %22 = vector.load %arg3[%c56, %c0_10] : memref<96x32xf32, #tpu.memory_space<vmem>>, vector<32x8xf32>
    %c88 = arith.constant 88 : index
    %c0_11 = arith.constant 0 : index
    %23 = vector.load %arg3[%c88, %c0_11] : memref<96x32xf32, #tpu.memory_space<vmem>>, vector<1x8xf32>
    %cst_12 = arith.constant dense<0.000000e+00> : vector<8x8xf32>
    %24 = tpu.matmul %21, %22, %cst_12 {dimension_numbers = #tpu.dot_dimension_numbers<[1], [0], [0], [1], [0, 0, 1, 1], [], []>} : vector<8x32xf32>, vector<32x8xf32>, vector<8x8xf32> -> vector<8x8xf32>
    %25 = vector.broadcast %23 : vector<1x8xf32> to vector<8x8xf32>
    %26 = arith.addf %24, %25 : vector<8x8xf32>
    %27 = tpu.iota {dimensions = array<i32: 1>} : vector<8x8xi32>
    %c2_i32 = arith.constant 2 : i32
    %28 = vector.broadcast %c2_i32 : i32 to vector<8x8xi32>
    %29 = arith.cmpi slt, %27, %28 : vector<8x8xi32>
    %cst_13 = arith.constant -1.000000e+30 : f32
    %30 = vector.broadcast %cst_13 : f32 to vector<8x8xf32>
    %31 = arith.select %29, %26, %30 : vector<8x8xi1>, vector<8x8xf32>
    %cst_14 = arith.constant dense<0xFF800000> : vector<8xf32>
    %32 = vector.multi_reduction <maximumf>, %31, %cst_14 [1] : vector<8x8xf32> to vector<8xf32>
    %33 = vector.shape_cast %32 : vector<8xf32> to vector<8x1xf32>
    %34 = vector.broadcast %33 : vector<8x1xf32> to vector<8x8xf32>
    %35 = arith.subf %31, %34 : vector<8x8xf32>
    %36 = math.exp %35 : vector<8x8xf32>
    %cst_15 = arith.constant dense<0.000000e+00> : vector<8xf32>
    %37 = vector.multi_reduction <add>, %36, %cst_15 [1] : vector<8x8xf32> to vector<8xf32>
    %38 = vector.shape_cast %37 : vector<8xf32> to vector<8x1xf32>
    %39 = tpu.reciprocal %38 {approx = true} : vector<8x1xf32> -> vector<8x1xf32>
    %40 = arith.mulf %38, %39 : vector<8x1xf32>
    %cst_16 = arith.constant 2.000000e+00 : f32
    %41 = vector.broadcast %cst_16 : f32 to vector<8x1xf32>
    %42 = arith.subf %41, %40 : vector<8x1xf32>
    %43 = arith.mulf %39, %42 : vector<8x1xf32>
    %44 = vector.broadcast %43 : vector<8x1xf32> to vector<8x8xf32>
    %45 = arith.mulf %36, %44 : vector<8x8xf32>
    %c0_17 = arith.constant 0 : index
    %c0_18 = arith.constant 0 : index
    %46 = vector.load %arg4[%c0_17, %c0_18] : memref<8x8xf32, #tpu.memory_space<vmem>>, vector<8x8xf32>
    tpu.vector_store %arg4[%c0_17, %c0_18], %45 {strides = array<i32>} : memref<8x8xf32, #tpu.memory_space<vmem>>, vector<8x8xf32>,
    return
  }
  func.func @transform_0(%arg0: i32) -> i32 {
    %c0_i32 = arith.constant 0 : i32
    %c0_i32_0 = arith.constant 0 : i32
    return %c0_i32 : i32
  }
  func.func @transform_1(%arg0: i32) -> (i32, i32) {
    %c0_i32 = arith.constant 0 : i32
    %c0_i32_0 = arith.constant 0 : i32
    return %arg0, %c0_i32 : i32, i32
  }
  func.func @transform_2(%arg0: i32) -> (i32, i32) {
    %c0_i32 = arith.constant 0 : i32
    %c0_i32_0 = arith.constant 0 : i32
    %c0_i32_1 = arith.constant 0 : i32
    return %c0_i32, %c0_i32_0 : i32, i32
  }
  func.func @transform_3(%arg0: i32) -> (i32, i32) {
    %c0_i32 = arith.constant 0 : i32
    %c0_i32_0 = arith.constant 0 : i32
    return %arg0, %c0_i32 : i32, i32
  }
}

</mosaic_0001>

<bundles_post_ra>
// kernel: tpu_custom_call.1
= control target key start
LH: loop header
LB: loop body
LE: loop exit
PB: predicated region body
PF: predicated region fallthrough
CT: control target
= control target key end

     0   :  { %vm24_vm0 = vcmask 64512   ;;  %v377_v3 = vmov 0.0   ;;  %vm378_vm1 = vmmov 0   ;;  %s451_s0 = inlined_call_operand.<no memory space> [shape: f32[1], index: 0, kind: input, shape index: {}]   ;;  %s452_s1 = inlined_call_operand.vmem [shape: f32[8,8], index: 1, kind: input, shape index: {}]   ;;  %s453_s2 = inlined_call_operand.vmem [shape: f32[96,32], index: 2, kind: input, shape index: {}]   ;;  %s454_s3 = inlined_call_operand.hbm [shape: f32[8,8], index: 3, kind: output, shape index: {}]  }
   0x1   :  { %v18_v0 = vld [vmem:[%s453_s2] sm:$0xff]  ;;  %v105_v2 = vld [vmem:[%s453_s2 + $0x28] sm:$0xff]  ;;  %321 = vmatprep.subr.mxu0 %v377_v3  ;;  %323 = vmatprep.mubr.msk.f32.mxu0 %vm378_vm1, %v377_v3 }
   0x2   :  { %v17_v1 = vld [vmem:[%s452_s1] sm:$0xff] }
   0x3   :  { %9 = vsyncpa [#allocation4], 0  ;;  %322 = vmatpush3.msra.mxu0 %v18_v0  ;;  %326 = vmatprep.subr.mxu1 %v377_v3  ;;  %v104_v4 = vld [vmem:[%s453_s2 + $0x20] sm:$0xff]  ;;  %v103_v5 = vld [vmem:[%s453_s2 + $0x18] sm:$0xff]  ;;  %v99_v10 = vstv %s451_s0  ;;  %vm111_vm3 = vcmask 261120   ;;  %v270_v24 = vlaneseq }
   0x4   :  { %324 = vmatmul.mubr.msk.f32.vlgmr.msra.gmra.mxu0 %vm24_vm0, %v17_v1  ;;  %327 = vmatpush3.msra.mxu1 %v105_v2  ;;  %v102_v6 = vld [vmem:[%s453_s2 + $0x10] sm:$0xff]  ;;  %v303_v8 = vld [vmem:[%s453_s2 + $0x8] ss:$0 sm:$0xff]  ;;  %v189_v16 = vld [vmem:[%s453_s2 + $0x40] sm:$0xff] }
   0x5   :  { %328 = vmatprep.subr.mxu1 %v377_v3  ;;  %334 = vmatprep.mubr.msk.f32.mxu1 %vm378_vm1, %v377_v3  ;;  %v191_v7 = vld [vmem:[%s453_s2 + $0x50] sm:$0xff]  ;;  %v190_v15 = vld [vmem:[%s453_s2 + $0x48] sm:$0xff]  ;;  %v188_v17 = vld [vmem:[%s453_s2 + $0x38] sm:$0xff]  ;;  %v271_v25 = vand.u32 127, %v270_v24 }
   0x6   :  { %337 = vmatprep.subr.mxu0 %v377_v3  ;;  %345 = vmatprep.mubr.msk.f32.mxu0 %vm378_vm1, %v377_v3  ;;  %v305_v18 = vld [vmem:[%s453_s2 + $0x30] ss:$0 sm:$0xff]  ;;  %v307_v26 = vld [vmem:[%s453_s2 + $0x58] ss:$0 sm:$0xff]  ;;  %s379_s2 = smov [#allocation3]  }
   0x7   :  { %329 = vmatpush3.msra.mxu1 %v104_v4  ;;  %338 = vmatpush3.msra.mxu0 %v191_v7  ;;  %vm272_vm5 = vcmp.lt.s32.totalorder %v271_v25, 2  ;;  %s295_s11 = sshll.u32 %s379_s2, 4  ;;  %s296_s11 = int_to_ptr.vmem [resolvable:$true] %s295_s11 }
   0x8   :  { %330 = vmatprep.subr.mxu1 %v377_v3  ;;  %339 = vmatprep.subr.mxu0 %v377_v3  ;;  %s355_s12 = scalar_lea.vmem %s296_s11, 128  ;;  %p360_p1 = scmp.lt.s32.totalorder %s296_s11, %s296_s11 }
   0x9   :  { %331 = vmatpush3.msra.mxu1 %v103_v5  ;;  %340 = vmatpush3.msra.mxu0 %v190_v15  ;;  %p356_p0 = scmp.ne.s32.totalorder %s296_s11, %s355_s12  ;;  %p361_p2 = scmp.lt.s32.totalorder %s355_s12, %s355_s12 }
   0xa   :  { %332 = vmatprep.subr.mxu1 %v377_v3  ;;  %341 = vmatprep.subr.mxu0 %v377_v3 }
   0xb   :  { %333 = vmatpush3.msra.mxu1 %v102_v6  ;;  %342 = vmatpush3.msra.mxu0 %v189_v16  ;;  %p362_p3 = por %p361_p2, %p360_p1 }
   0xc   :  { %343 = vmatprep.subr.mxu0 %v377_v3 }
   0xd   :  { %344 = vmatpush3.msra.mxu0 %v188_v17  ;;  %p363_p4 = pnand %p362_p3, %p356_p0 }
  0xc4   :  { %v94_v9 = vpop.f32.mrf.mxu0 }
  0xc5   :  { %v95_v11 = vadd.f32 %v303_v8, %v94_v9 }
  0xc6   :  { %v325_v12 = vpop.f32.mrf.mxu0 }
  0xc7   :  { %vm98_vm2 = vcmp.ge.f32.partialorder %v95_v11, 0.0  ;;  %v100_v13 = vmul.f32 %v99_v10, %v95_v11 }
  0xc9   :  { %v101_v14 = vsel %vm98_vm2, %v95_v11, %v100_v13 }
  0xca   :  { %335 = vmatmul.mubr.msk.f32.vlgmr.msra.gmra.mxu1 %vm111_vm3, %v101_v14 }
 0x18a   :  { %v181_v19 = vpop.f32.mrf.mxu1 }
 0x18b   :  { %v182_v20 = vadd.f32 %v305_v18, %v181_v19 }
 0x18c   :  { %v336_v21 = vpop.f32.mrf.mxu1 }
 0x18d   :  { %vm185_vm4 = vcmp.ge.f32.partialorder %v182_v20, 0.0  ;;  %v186_v22 = vmul.f32 %v182_v20, %v99_v10 }
 0x18f   :  { %v187_v23 = vsel %vm185_vm4, %v182_v20, %v186_v22 }
 0x190   :  { %346 = vmatmul.mubr.msk.f32.vlgmr.msra.gmra.mxu0 %vm111_vm3, %v187_v23 }
 0x250   :  { %v266_v27 = vpop.f32.mrf.mxu0 }
 0x251   :  { %v267_v28 = vadd.f32 %v307_v26, %v266_v27 }
 0x252   :  { %v347_v29 = vpop.f32.mrf.mxu0 }
 0x253   :  { %v273_v30 = vsel %vm272_vm5, %v267_v28, -1e+30 }
 0x254   :  { %v274_v31 = vsel %vm24_vm0, %v273_v30, -inf }
 0x255   :  { %275 = vmax.xlane.f32.xlu0 %v274_v31 }
 0x2de   :  { %v276_v32 = vpop.xlane.xlu0 %275 }
 0x2df   :  { %v277_v33 = vsub.f32 %v273_v30, %v276_v32 }
 0x2e1   :  { %v278_v34 = vmul.f32 1.442695, %v277_v33 }
 0x2e3   :  { %351 = vpow2.f32 %v278_v34 }
 0x2f0   :  { %v352_v35 = vpop.eup %351 }
 0x2f1   :  { %v280_v36 = vsel %vm24_vm0, %v352_v35, 0.0 }
 0x2f2   :  { %281 = vadd.xlane.f32.xlu0 %v280_v36 }
 0x37b   :  { %v282_v37 = vpop.xlane.xlu0 %281 }
 0x37c   :  { %353 = vrcp.f32 %v282_v37 }
 0x389   :  { %v354_v38 = vpop.eup %353 }
 0x38a   :  { %v284_v39 = vmul.f32 %v354_v38, %v282_v37 }
 0x38c   :  { %v285_v40 = vsub.f32 2.0, %v284_v39 }
 0x38e   :  { %v286_v41 = vmul.f32 %v354_v38, %v285_v40 }
 0x390   :  { %v287_v42 = vmul.f32 %v352_v35, %v286_v41 }
 0x392   :  { %288 = vst.msk [vmem:[#allocation3] sm:$0xff] %vm24_vm0, %v287_v42 }
 0x393   :  { %366 = shalt.err (!%p363_p4)
}
 0x394   :  { %298 = dma.vmem_to_hbm [thread:$0]  %s296_s11, 128, %s454_s3, [#allocation4]  }
 0x395   :  { %375 = dma.done.wait [#allocation4], 128  }
 0x396   :  { %376 = vsyncadd [#allocation4], 4294967168 }
 0x397   :  { %302 = vsyncpa [#allocation4], 1 }

</bundles_post_ra>
